<compile_context>
chip_gen: v7x
topology: tpu7x:2x2x1
jax: 0.10.0
libtpu: 0.0.40
codegen_flags: <defaults>
</compile_context>

<pallas_src>
import functools
import math

import jax
import jax.numpy as jnp
from jax.experimental import pallas as pl
from jax.experimental.pallas import tpu as pltpu


_TARGET_TQ = 512                    # contraction-tile target (rows * padded W)
_WEIGHT_SLAB_BYTES = 8 * 1024 * 1024  # cap for the (TQ, TP) f32 weight slab


def _round_up(x: int, m: int) -> int:
    return ((x + m - 1) // m) * m


def _warp2d_kernel(qlo_ref, qhi_ref, crd_ref, img_ref, out_ref, *scratch,
                   KQ: int, Wq: int, TP: int, weight_dtype, mxu_dtype):
    # crd_ref: (1, 2, TP) absolute source coords of this p tile
    # img_ref: (1, C, TQ) one q tile = KQ whole padded image rows (TQ = KQ*Wq)
    # out_ref: (1, C, TP) resident across the q axis
    # scratch: optional (C, TP) f32 accumulator (only for non-f32 images)
    b = pl.program_id(0)
    j = pl.program_id(1)      # p (output pixel) tile
    k = pl.program_id(2)      # q (input row group) tile -- accumulation axis
    acc_ref = scratch[0] if scratch else None

    @pl.when(k == 0)
    def _init():
        if acc_ref is not None:
            acc_ref[...] = jnp.zeros_like(acc_ref)
        else:
            out_ref[...] = jnp.zeros_like(out_ref)

    # Band skip: only q row-tiles inside [qlo, qhi] can have nonzero weights.
    in_band = jnp.logical_and(k >= qlo_ref[b, j], k <= qhi_ref[b, j])

    @pl.when(in_band)
    def _accumulate():
        crd = crd_ref[0].astype(jnp.float32)          # (2, TP)
        iy = crd[0:1, :]                              # (1, TP) abs row coord
        ix = crd[1:2, :]                              # (1, TP) abs col coord

        # Separable tent weights: KQ distinct source rows, Wq distinct cols.
        r0 = k * KQ
        qy = (r0 + jax.lax.broadcasted_iota(jnp.int32, (KQ, 1), 0)
              ).astype(jnp.float32)                   # (KQ, 1)
        qx = jax.lax.broadcasted_iota(jnp.int32, (Wq, 1), 0
                                      ).astype(jnp.float32)   # (Wq, 1)

        # Coordinate subtraction always in f32 (bf16 would corrupt fractions
        # for coordinates >= ~256); only the bounded [0,1] weights get cast.
        wy = jnp.maximum(0.0, 1.0 - jnp.abs(iy - qy))         # (KQ, TP)
        wx = jnp.maximum(0.0, 1.0 - jnp.abs(ix - qx))         # (Wq, TP)
        wy = wy.astype(weight_dtype)
        wx = wx.astype(weight_dtype)

        # Assemble the (TQ, TP) slab with one multiply per element; the
        # (KQ, Wq, TP) -> (KQ*Wq, TP) reshape is layout-free since Wq % 8 == 0.
        m_t = (wy[:, None, :] * wx[None, :, :]).reshape(KQ * Wq, TP)

        img = img_ref[0].astype(mxu_dtype)                    # (C, TQ)
        contrib = jnp.dot(img, m_t.astype(mxu_dtype),
                          preferred_element_type=jnp.float32)  # (C, TP)
        if acc_ref is not None:
            acc_ref[...] += contrib
        else:
            out_ref[0] += contrib

    if acc_ref is not None:
        @pl.when(k == pl.num_programs(2) - 1)
        def _finalize():
            out_ref[0] = acc_ref[...].astype(out_ref.dtype)


def warp_pallas(image: jax.Array, ddf: jax.Array, *, tp: int | None = None,
                kq: int | None = None, mxu_dtype=None,
                weight_dtype=None) -> jax.Array:
    """Pallas implementation of MONAI Warp(spatial_dims=2) forward.

    mxu_dtype:   operand dtype for the MXU contraction (None -> f32 for f32
                 images, bf16 for bf16 images).  Pass jnp.bfloat16 on v6e/v7x
                 (and v5e) for the fast path.
    weight_dtype: dtype of the assembled weight slab (None -> mxu_dtype).  On
                 v5e (no bf16 VALU) pass weight_dtype=jnp.float32 together
                 with mxu_dtype=jnp.bfloat16.
    """
    B, C, H, W = image.shape
    assert ddf.shape == (B, 2, H, W), ddf.shape
    HW = H * W

    if mxu_dtype is None:
        mxu_dtype = jnp.bfloat16 if image.dtype == jnp.bfloat16 else jnp.float32
    if weight_dtype is None:
        weight_dtype = mxu_dtype

    # ---- q (input pixel / contraction) tiling: whole padded rows -----------
    Wq = _round_up(W, 8)                       # sublane-aligned padded width
    kq0 = 128 // math.gcd(Wq, 128)             # smallest row group with TQ%128==0
    if kq is None:
        kq = kq0 * max(1, _TARGET_TQ // (kq0 * Wq))
        kq = min(kq, _round_up(H, kq0))        # never more rows than the image
    assert kq % kq0 == 0, (kq, kq0)
    Hq = _round_up(H, kq)
    nq = Hq // kq
    tq = kq * Wq                               # multiple of 128 by construction

    # ---- p (output pixel) tiling: lane-dense, VMEM-bounded ------------------
    if tp is None:
        budget = max(128, ((_WEIGHT_SLAB_BYTES // (4 * tq)) // 128) * 128)
        tp = min(1024, budget, _round_up(HW, 128))
    assert tp % 128 == 0, tp
    p_pad = _round_up(HW, tp)
    np_tiles = p_pad // tp

    # Zero-padded image rows/cols contribute exactly zero (tent weight * 0).
    img_flat = jnp.pad(
        image, ((0, 0), (0, 0), (0, Hq - H), (0, Wq - W))).reshape(B, C, Hq * Wq)

    # Absolute source coordinates = reference grid + ddf (the module's grid
    # add), lane-dense (B, 2, P_pad): channel 0 = abs row, channel 1 = abs col.
    ref_y = jnp.arange(H, dtype=jnp.float32).reshape(1, H, 1)
    ref_x = jnp.arange(W, dtype=jnp.float32).reshape(1, 1, W)
    coords = jnp.stack([ref_y + ddf[:, 0].astype(jnp.float32),
                        ref_x + ddf[:, 1].astype(jnp.float32)],
                       axis=1).reshape(B, 2, HW)
    if p_pad > HW:
        coords = jnp.pad(coords, ((0, 0), (0, 0), (0, p_pad - HW)), mode="edge")

    # Per-(batch, p-tile) band of q row-tiles that can contribute: q tile k
    # (rows [k*kq, (k+1)*kq)) overlaps iff floor(min iy)//kq <= k <= ceil(max iy)//kq.
    iy_tiles = coords[:, 0, :].reshape(B, np_tiles, tp)
    ymin = jnp.floor(iy_tiles.min(axis=-1)).astype(jnp.int32)
    ymax = jnp.ceil(iy_tiles.max(axis=-1)).astype(jnp.int32)
    qlo = jnp.clip(ymin // kq, 0, nq - 1).astype(jnp.int32)   # (B, NP)
    qhi = jnp.clip(ymax // kq, 0, nq - 1).astype(jnp.int32)   # (B, NP)

    kernel = functools.partial(_warp2d_kernel, KQ=kq, Wq=Wq, TP=tp,
                               weight_dtype=weight_dtype, mxu_dtype=mxu_dtype)
    # For f32 images accumulate directly in the resident output block; only
    # non-f32 outputs need a separate f32 accumulator.
    use_scratch = image.dtype != jnp.float32
    scratch_shapes = [pltpu.VMEM((C, tp), jnp.float32)] if use_scratch else []

    out = pl.pallas_call(
        kernel,
        out_shape=jax.ShapeDtypeStruct((B, C, p_pad), image.dtype),
        grid_spec=pltpu.PrefetchScalarGridSpec(
            num_scalar_prefetch=2,
            grid=(B, np_tiles, nq),
            in_specs=[
                # coordinates of this p tile
                pl.BlockSpec((1, 2, tp), lambda b, j, k, lo, hi: (b, 0, j)),
                # image q tile; out-of-band steps are clamped into the band so
                # the repeated block index elides the DMA.
                pl.BlockSpec(
                    (1, C, tq),
                    lambda b, j, k, lo, hi: (
                        b, 0,
                        jnp.minimum(jnp.maximum(k, lo[b, j]), hi[b, j]))),
            ],
            out_specs=pl.BlockSpec((1, C, tp), lambda b, j, k, lo, hi: (b, 0, j)),
            scratch_shapes=scratch_shapes,
        ),
        compiler_params=pltpu.CompilerParams(
            dimension_semantics=("parallel", "parallel", "arbitrary"),
            vmem_limit_bytes=32 * 1024 * 1024,
        ),
    )(qlo, qhi, coords, img_flat)
    return out[:, :, :HW].reshape(B, C, H, W)


def warp_reference(image: jax.Array, ddf: jax.Array) -> jax.Array:
    """Pure-JAX reference: bilinear grid sample, zeros padding, align_corners."""
    B, C, H, W = image.shape
    yy = jnp.arange(H, dtype=jnp.float32)[None, :, None]
    xx = jnp.arange(W, dtype=jnp.float32)[None, None, :]
    iy = yy + ddf[:, 0]                       # (B, H, W)
    ix = xx + ddf[:, 1]
    y0 = jnp.floor(iy)
    x0 = jnp.floor(ix)
    fy = iy - y0
    fx = ix - x0
    y0i = y0.astype(jnp.int32)
    x0i = x0.astype(jnp.int32)

    bidx = jnp.arange(B)[:, None, None, None]
    cidx = jnp.arange(C)[None, :, None, None]

    def gather(yi, xi):
        valid = (yi >= 0) & (yi < H) & (xi >= 0) & (xi < W)
        yc = jnp.clip(yi, 0, H - 1)
        xc = jnp.clip(xi, 0, W - 1)
        vals = image[bidx, cidx, yc[:, None], xc[:, None]]   # (B, C, H, W)
        return vals * valid[:, None].astype(image.dtype)

    v00 = gather(y0i, x0i)
    v01 = gather(y0i, x0i + 1)
    v10 = gather(y0i + 1, x0i)
    v11 = gather(y0i + 1, x0i + 1)
    w00 = ((1 - fy) * (1 - fx))[:, None]
    w01 = ((1 - fy) * fx)[:, None]
    w10 = (fy * (1 - fx))[:, None]
    w11 = (fy * fx)[:, None]
    return v00 * w00 + v01 * w01 + v10 * w10 + v11 * w11


if __name__ == "__main__":
    # Warp has no learnable parameters; only inputs are needed.
    key = jax.random.PRNGKey(0)
    k_img, k_ddf, k_img2, k_ddf2 = jax.random.split(key, 4)

    B, C, H, W = 2, 4, 16, 16
    image = jax.random.normal(k_img, (B, C, H, W), dtype=jnp.float32)
    ddf = 2.0 * jax.random.normal(k_ddf, (B, 2, H, W), dtype=jnp.float32)
    ref = warp_reference(image, ddf)

    # 1) Default tiling, exact f32 path.
    out = jax.block_until_ready(warp_pallas(image, ddf))
    assert out.shape == image.shape and out.dtype == image.dtype
    assert jnp.allclose(out, ref, atol=1e-4, rtol=1e-4), \
        float(jnp.max(jnp.abs(out - ref)))

    # 2) Forced small tiles: exercises p tiling, q accumulation and banding
    #    (grid = (2, 2, 2)).
    out_t = jax.block_until_ready(warp_pallas(image, ddf, tp=128, kq=8))
    assert jnp.allclose(out_t, ref, atol=1e-4, rtol=1e-4), \
        float(jnp.max(jnp.abs(out_t - ref)))

    # 3) Identity warp: zero ddf must reproduce the image exactly even though
    #    band skipping drops the off-band q tiles.
    out_id = jax.block_until_ready(
        warp_pallas(image, jnp.zeros_like(ddf), tp=128, kq=8))
    assert jnp.allclose(out_id, image, atol=1e-5), "identity warp mismatch"

    # 4) bf16 weights / MXU operands (v6e / v7x fast path), looser tolerance.
    out_bf = jax.block_until_ready(
        warp_pallas(image, ddf, tp=128, kq=8, mxu_dtype=jnp.bfloat16))
    err_bf = float(jnp.max(jnp.abs(out_bf - ref)))
    assert err_bf < 5e-2, err_bf

    # 5) Non-128-aligned spatial shape: exercises the H/W/HW padding paths
    #    (previously a guaranteed VMEM blow-up).
    B2, C2, H2, W2 = 1, 3, 10, 12
    image2 = jax.random.normal(k_img2, (B2, C2, H2, W2), dtype=jnp.float32)
    ddf2 = 1.5 * jax.random.normal(k_ddf2, (B2, 2, H2, W2), dtype=jnp.float32)
    out2 = jax.block_until_ready(warp_pallas(image2, ddf2))
    ref2 = warp_reference(image2, ddf2)
    assert jnp.allclose(out2, ref2, atol=1e-4, rtol=1e-4), \
        float(jnp.max(jnp.abs(out2 - ref2)))

    print("KERNEL_OK")
</pallas_src>

<mosaic_0001>
module attributes {stable_mosaic.version = 11 : i64} {
  func.func @_warp2d_kernel(%arg0: i32, %arg1: i32, %arg2: i32, %arg3: memref<2x1xi32, #tpu.memory_space<smem>>, %arg4: memref<2x1xi32, #tpu.memory_space<smem>>, %arg5: memref<1x2x256xf32, #tpu.memory_space<vmem>>, %arg6: memref<1x4x256xf32, #tpu.memory_space<vmem>>, %arg7: memref<1x4x256xf32, #tpu.memory_space<vmem>>) attributes {dimension_semantics = [#tpu.dimension_semantics<parallel>, #tpu.dimension_semantics<parallel>, #tpu.dimension_semantics<arbitrary>], iteration_bounds = array<i64: 2, 1, 1>, scalar_prefetch = 2 : i64, scratch_operands = 0 : i64, tpu.core_type = #tpu.core_type<tc>, window_params = [{transform_indices = @transform_0, window_bounds = array<i64: 1, 2, 256>}, {transform_indices = @transform_1, window_bounds = array<i64: 1, 4, 256>}, {transform_indices = @transform_2, window_bounds = array<i64: 1, 4, 256>}]} {
    %c0_i32 = arith.constant 0 : i32
    %0 = arith.cmpi eq, %arg2, %c0_i32 : i32
    %1 = arith.extui %0 : i1 to i32
    %c0_i32_0 = arith.constant 0 : i32
    %2 = arith.cmpi ne, %1, %c0_i32_0 : i32
    scf.if %2 {
      %cst = arith.constant 0.000000e+00 : f32
      %14 = vector.broadcast %cst : f32 to vector<1x4x256xf32>
      %c0 = arith.constant 0 : index
      %c0_2 = arith.constant 0 : index
      %c0_3 = arith.constant 0 : index
      %15 = vector.load %arg7[%c0, %c0_2, %c0_3] : memref<1x4x256xf32, #tpu.memory_space<vmem>>, vector<1x4x256xf32>
      tpu.vector_store %arg7[%c0, %c0_2, %c0_3], %14 {strides = array<i32>} : memref<1x4x256xf32, #tpu.memory_space<vmem>>, vector<1x4x256xf32>,
    } else {
    }
    %3 = arith.index_cast %arg0 : i32 to index
    %4 = arith.index_cast %arg1 : i32 to index
    %5 = memref.load %arg3[%3, %4] : memref<2x1xi32, #tpu.memory_space<smem>>
    %6 = arith.cmpi sge, %arg2, %5 : i32
    %7 = arith.index_cast %arg0 : i32 to index
    %8 = arith.index_cast %arg1 : i32 to index
    %9 = memref.load %arg4[%7, %8] : memref<2x1xi32, #tpu.memory_space<smem>>
    %10 = arith.cmpi sle, %arg2, %9 : i32
    %11 = arith.andi %6, %10 : i1
    %12 = arith.extui %11 : i1 to i32
    %c0_i32_1 = arith.constant 0 : i32
    %13 = arith.cmpi ne, %12, %c0_i32_1 : i32
    scf.if %13 {
      %c0 = arith.constant 0 : index
      %c0_2 = arith.constant 0 : index
      %c0_3 = arith.constant 0 : index
      %14 = vector.load %arg5[%c0, %c0_2, %c0_3] : memref<1x2x256xf32, #tpu.memory_space<vmem>>, vector<1x2x256xf32>
      %15 = vector.shape_cast %14 : vector<1x2x256xf32> to vector<2x256xf32>
      %16 = vector.extract_strided_slice %15 {offsets = [0, 0], sizes = [1, 256], strides = [1, 1]} : vector<2x256xf32> to vector<1x256xf32>
      %17 = vector.extract_strided_slice %15 {offsets = [1, 0], sizes = [1, 256], strides = [1, 1]} : vector<2x256xf32> to vector<1x256xf32>
      %c16_i32 = arith.constant 16 : i32
      %18 = arith.muli %arg2, %c16_i32 : i32
      %19 = tpu.iota {dimensions = array<i32: 0>} : vector<16x1xi32>
      %20 = vector.broadcast %18 : i32 to vector<16x1xi32>
      %21 = arith.addi %20, %19 : vector<16x1xi32>
      %22 = arith.sitofp %21 : vector<16x1xi32> to vector<16x1xf32>
      %23 = tpu.iota {dimensions = array<i32: 0>} : vector<16x1xi32>
      %24 = arith.sitofp %23 : vector<16x1xi32> to vector<16x1xf32>
      %25 = vector.broadcast %16 : vector<1x256xf32> to vector<16x256xf32>
      %26 = vector.broadcast %22 : vector<16x1xf32> to vector<16x256xf32>
      %27 = arith.subf %25, %26 : vector<16x256xf32>
      %28 = math.absf %27 : vector<16x256xf32>
      %cst = arith.constant 1.000000e+00 : f32
      %29 = vector.broadcast %cst : f32 to vector<16x256xf32>
      %30 = arith.subf %29, %28 : vector<16x256xf32>
      %cst_4 = arith.constant 0.000000e+00 : f32
      %31 = vector.broadcast %cst_4 : f32 to vector<16x256xf32>
      %32 = arith.maximumf %31, %30 : vector<16x256xf32>
      %33 = vector.broadcast %17 : vector<1x256xf32> to vector<16x256xf32>
      %34 = vector.broadcast %24 : vector<16x1xf32> to vector<16x256xf32>
      %35 = arith.subf %33, %34 : vector<16x256xf32>
      %36 = math.absf %35 : vector<16x256xf32>
      %cst_5 = arith.constant 1.000000e+00 : f32
      %37 = vector.broadcast %cst_5 : f32 to vector<16x256xf32>
      %38 = arith.subf %37, %36 : vector<16x256xf32>
      %cst_6 = arith.constant 0.000000e+00 : f32
      %39 = vector.broadcast %cst_6 : f32 to vector<16x256xf32>
      %40 = arith.maximumf %39, %38 : vector<16x256xf32>
      %41 = vector.shape_cast %32 : vector<16x256xf32> to vector<16x1x256xf32>
      %42 = vector.shape_cast %40 : vector<16x256xf32> to vector<1x16x256xf32>
      %43 = vector.broadcast %41 : vector<16x1x256xf32> to vector<16x16x256xf32>
      %44 = vector.broadcast %42 : vector<1x16x256xf32> to vector<16x16x256xf32>
      %45 = arith.mulf %43, %44 : vector<16x16x256xf32>
      %46 = vector.shape_cast %45 : vector<16x16x256xf32> to vector<256x256xf32>
      %c0_7 = arith.constant 0 : index
      %c0_8 = arith.constant 0 : index
      %c0_9 = arith.constant 0 : index
      %47 = vector.load %arg6[%c0_7, %c0_8, %c0_9] : memref<1x4x256xf32, #tpu.memory_space<vmem>>, vector<1x4x256xf32>
      %48 = vector.shape_cast %47 : vector<1x4x256xf32> to vector<4x256xf32>
      %cst_10 = arith.constant dense<0.000000e+00> : vector<4x256xf32>
      %49 = tpu.matmul %48, %46, %cst_10 {dimension_numbers = #tpu.dot_dimension_numbers<[1], [0], [0], [1], [0, 0, 1, 1], [], []>} : vector<4x256xf32>, vector<256x256xf32>, vector<4x256xf32> -> vector<4x256xf32>
      %c0_11 = arith.constant 0 : index
      %c0_12 = arith.constant 0 : index
      %c0_13 = arith.constant 0 : index
      %50 = vector.load %arg7[%c0_11, %c0_12, %c0_13] : memref<1x4x256xf32, #tpu.memory_space<vmem>>, vector<1x4x256xf32>
      %51 = vector.shape_cast %50 : vector<1x4x256xf32> to vector<4x256xf32>
      %52 = arith.addf %51, %49 : vector<4x256xf32>
      %c0_14 = arith.constant 0 : index
      %c0_15 = arith.constant 0 : index
      %c0_16 = arith.constant 0 : index
      %53 = vector.load %arg7[%c0_14, %c0_15, %c0_16] : memref<1x4x256xf32, #tpu.memory_space<vmem>>, vector<1x4x256xf32>
      %54 = vector.shape_cast %53 : vector<1x4x256xf32> to vector<4x256xf32>
      %55 = vector.shape_cast %52 : vector<4x256xf32> to vector<1x4x256xf32>
      tpu.vector_store %arg7[%c0_14, %c0_15, %c0_16], %55 {strides = array<i32>} : memref<1x4x256xf32, #tpu.memory_space<vmem>>, vector<1x4x256xf32>,
    } else {
    }
    return
  }
  func.func @transform_0(%arg0: i32, %arg1: i32, %arg2: i32, %arg3: memref<2x1xi32, #tpu.memory_space<smem>>, %arg4: memref<2x1xi32, #tpu.memory_space<smem>>) -> (i32, i32, i32) {
    %c0_i32 = arith.constant 0 : i32
    %c0_i32_0 = arith.constant 0 : i32
    return %arg0, %c0_i32, %arg1 : i32, i32, i32
  }
  func.func @transform_1(%arg0: i32, %arg1: i32, %arg2: i32, %arg3: memref<2x1xi32, #tpu.memory_space<smem>>, %arg4: memref<2x1xi32, #tpu.memory_space<smem>>) -> (i32, i32, i32) {
    %0 = arith.index_cast %arg0 : i32 to index
    %1 = arith.index_cast %arg1 : i32 to index
    %2 = memref.load %arg3[%0, %1] : memref<2x1xi32, #tpu.memory_space<smem>>
    %3 = arith.maxsi %arg2, %2 : i32
    %4 = arith.index_cast %arg0 : i32 to index
    %5 = arith.index_cast %arg1 : i32 to index
    %6 = memref.load %arg4[%4, %5] : memref<2x1xi32, #tpu.memory_space<smem>>
    %7 = arith.minsi %3, %6 : i32
    %c0_i32 = arith.constant 0 : i32
    %c0_i32_0 = arith.constant 0 : i32
    return %arg0, %c0_i32, %7 : i32, i32, i32
  }
  func.func @transform_2(%arg0: i32, %arg1: i32, %arg2: i32, %arg3: memref<2x1xi32, #tpu.memory_space<smem>>, %arg4: memref<2x1xi32, #tpu.memory_space<smem>>) -> (i32, i32, i32) {
    %c0_i32 = arith.constant 0 : i32
    %c0_i32_0 = arith.constant 0 : i32
    return %arg0, %c0_i32, %arg1 : i32, i32, i32
  }
}

</mosaic_0001>

<bundles_post_ra>
// kernel: tpu_custom_call.1
= control target key start
LH: loop header
LB: loop body
LE: loop exit
PB: predicated region body
PF: predicated region fallthrough
CT: control target
= control target key end

     0   :  { %s1625_s0 = inlined_call_operand.vmem [shape: s32[2,1], index: 0, kind: input, shape index: {}]   ;;  %s1626_s2 = inlined_call_operand.hbm [shape: f32[2,2,256], index: 2, kind: input, shape index: {}]   ;;  %s1627_s3 = inlined_call_operand.vmem [shape: f32[2,4,256], index: 3, kind: input, shape index: {}]   ;;  %s1628_s4 = inlined_call_operand.hbm [shape: f32[2,4,256], index: 4, kind: output, shape index: {}]   ;;  %s1629_s1 = inlined_call_operand.vmem [shape: s32[2,1], index: 1, kind: input, shape index: {}]  }
   0x1   :  { %s9_s17 = sshll.u32 %s1625_s0, 4  ;;  %s13_s20 = sshll.u32 %s1629_s1, 4  ;;  %s10_s17 = int_to_ptr.vmem [resolvable:$true] %s9_s17  ;;  %s14_s20 = int_to_ptr.vmem [resolvable:$true] %s13_s20 }
   0x2   :  { %s1119_s21 = scalar_lea.vmem %s10_s17, 32  ;;  %p1124_p1 = scmp.lt.s32.totalorder %s10_s17, %s10_s17 }
   0x3   :  { %p1120_p0 = scmp.ne.s32.totalorder %s10_s17, %s1119_s21  ;;  %p1125_p2 = scmp.lt.s32.totalorder %s1119_s21, %s1119_s21 }
   0x5   :  { %p1126_p3 = por %p1125_p2, %p1124_p1 }
   0x7   :  { %p1127_p4 = pnand %p1126_p3, %p1120_p0 }
   0x9   :  { %1130 = shalt.err (!%p1127_p4)  }
   0xa   :  { %s1259_s22 = smov [#allocation3]   ;;  %s1131_s23 = scalar_lea.vmem %s14_s20, 32 }
   0xb   :  { %12 = dma.vmem_to_smem %s10_s17, 32, %s1259_s22, [#allocation2] }
   0xc   :  { %p1132_p5 = scmp.ne.s32.totalorder %s14_s20, %s1131_s23  ;;  %p1136_p6 = scmp.lt.s32.totalorder %s14_s20, %s14_s20 }
   0xd   :  { %p1137_p7 = scmp.lt.s32.totalorder %s1131_s23, %s1131_s23 }
   0xf   :  { %p1138_p8 = por %p1137_p7, %p1136_p6 }
  0x11   :  { %p1139_p9 = pnand %p1138_p8, %p1132_p5 }
  0x13   :  { %1142 = shalt.err (!%p1139_p9)  }
  0x14   :  { %s1260_s0 = smov [#allocation4]  }
  0x15   :  { %16 = dma.vmem_to_smem %s14_s20, 32, %s1260_s0, [#allocation2] }
  0x16   :  { %1225 = dma.done.wait [#allocation2], 64 }
  0x17   :  { %1226 = vsyncadd [#allocation2], 4294967232 }
  0x18   :  { %18 = sfence }
  0x19   :  { %19 = vsyncpa [#allocation6], 0 }
  0x1a   :  { %21 = vsyncpa [#allocation6 + $0x1], 0 }
  0x1b   :  { %22 = vsyncpa [#allocation7], 0 }
  0x1c   :  { %24 = vsyncpa [#allocation7 + $0x1], 0  ;;  %s1296_s1 = smov 0   ;;  %s1298_s24 = smov 0  }
  0x1d   :  { %s1300_s25 = smov 0   ;;  %s1302_s26 = smov 0  }
  0x1e   :  { %s1304_s27 = smov 0   ;;  %s1306_s28 = smov 0  }
  0x1f LB: > { %s959_s29 = sadd.s32 4294967295, %s1257_s28   ;;  %s960_s30 = sadd.s32 4294967294, %s1257_s28   ;;  %s1257_s28 = sphi %s1306_s28, %s30_s28   ;;  %s1253_s27 = sphi %s1304_s27, %s1645_s27   ;;  %s1249_s26 = sphi %s1302_s26, %s1644_s26   ;;  %s1245_s25 = sphi %s1300_s25, %s1643_s25   ;;  %s1241_s24 = sphi %s1298_s24, %s1642_s24   ;;  %s1237_s1 = sphi %s1296_s1, %s1641_s1  }
  0x20   : > { %s49_s5 = sadd.s32 1, %s1253_s27  ;;  %s58_s6 = sadd.s32 1, %s1245_s25 }
  0x21   : > { %p51_p10 = scmp.ge.s32.totalorder %s49_s5, 2  ;;  %p65_p11 = scmp.ne.s32.totalorder %s1245_s25, %s1241_s24 }
  0x22   : > { %p66_p12 = scmp.eq.s32.totalorder %s1257_s28, 0  ;;  %p71_p13 = scmp.ne.s32.totalorder %s1241_s24, %s1237_s1 }
  0x23   : > { %s1647_s5 = smov (%p51_p10, %s49_s5), 0  ;;  %p72_p1 = scmp.eq.s32.totalorder %s959_s29, 0 }
  0x24   : > { %p1337_p0 = por %p66_p12, %p65_p11  ;;  %s53_s8 = ssub.s32 %s1253_s27, %s1647_s5 }
  0x25   : > { %p151_p2 = scmp.eq.s32.totalorder %s959_s29, 1  ;;  %p56_p3 = scmp.eq.s32.totalorder %s53_s8, 0 }
  0x26   : > { %p1343_p4 = por %p72_p1, %p71_p13  ;;  %p157_p6 = scmp.eq.s32.totalorder %s960_s30, 1 }
  0x27   : > { %p1347_p5 = por %p151_p2, %p65_p11  ;;  %p1064_p9 = scmp.lt.s32.totalorder %s1257_s28, 2 }
  0x28   : > { %s1352_s11 = scalar_select %p56_p3, %s1245_s25, %s58_s6  }
  0x29   : > { %s1633_s10 = scalar_select %p1347_p5, 1, 0 }
  0x2a   : > { %p1354_p7 = por %p157_p6, %p71_p13  ;;  %s177_s13 = sand.u32 1, %s1245_s25  }
  0x2b   : > { %s967_s14 = sshll.u32 %s177_s13, 2  ;;  %s986_s15 = sshll.u32 %s1253_s27, 6 }
  0x2c   : > { %s1634_s12 = scalar_select %p1354_p7, 1, 0 }
  0x2d   : > { %s1365_s18 = scalar_lea.hbm %s1626_s2, %s986_s15  ;;  %s181_s19 = scalar_lea.vmem [#allocation5], %s967_s14 }
  0x2e   : > { %s191_s20 = sshll.u32 %s181_s19, 4  ;;  %p1371_p10 = pnand %p1064_p9, %p1337_p0  ;;  %s1367_s20 = int_to_ptr.vmem [resolvable:$true] %s191_s20 }
  0x2f   : > { %s178_s22 = scalar_lea.sflag [#allocation6], %s177_s13  ;;  %s1143_s23 = scalar_lea.hbm %s1365_s18, 64 }
  0x30   : > { %p1144_p13 = scmp.ne.s32.totalorder %s1365_s18, %s1143_s23  ;;  %p1145_p1 = pneg %p1371_p10 }
  0x31   : > { %s1148_s30 = scalar_lea.hbm %s1626_s2, 128  ;;  %p1149_p0 = scmp.lt.u32.totalorder %s1365_s18, %s1626_s2 }
  0x32   : > { %p1146_p2 = pnand %p1145_p1, %p1144_p13  ;;  %p1150_p6 = scmp.lt.u32.totalorder %s1148_s30, %s1143_s23 }
  0x33   : > { %p1152_p8 = scmp.lt.u32.totalorder %s1143_s23, %s1365_s18 }
  0x34   : > { %p1147_p3 = pneg %p1146_p2  ;;  %p1151_p9 = por %p1150_p6, %p1149_p0 }
  0x36   : > { %p1153_p11 = por %p1152_p8, %p1151_p9 }
  0x38   : > { %p1154_p12 = pnand %p1153_p11, %p1147_p3 }
  0x3a   : > { %1157 = shalt.err (!%p1154_p12)
}
  0x3b   : > { %s1158_s8 = scalar_lea.vmem %s1367_s20, 64  ;;  %s1261_s13 = smov [#allocation5]  }
  0x3c   : > { %p1159_p13 = scmp.ne.s32.totalorder %s1367_s20, %s1158_s8  ;;  %s1163_s14 = sshll.u32 %s1261_s13, 4  ;;  %s1164_s14 = int_to_ptr.vmem [resolvable:$false] %s1163_s14 }
  0x3d   : > { %s1165_s15 = scalar_lea.vmem %s1164_s14, 128  ;;  %p1166_p5 = scmp.lt.s32.totalorder %s1367_s20, %s1164_s14 }
  0x3e   : > { %p1161_p2 = pnand %p1159_p13, %p1145_p1  ;;  %p1167_p0 = scmp.lt.s32.totalorder %s1165_s15, %s1158_s8 }
  0x40   : > { %p1162_p7 = pneg %p1161_p2  ;;  %p1168_p6 = por %p1167_p0, %p1166_p5 }
  0x42   : > { %p1169_p8 = pnand %p1168_p6, %p1162_p7 }
  0x44   : > { %1172 = shalt.err (!%p1169_p8)
}
  0x45   : > { %1059 = dma.hbm_to_vmem [thread:$0]  (!%p1371_p10), %s1365_s18, 64, %s1367_s20, %s178_s22  }
  0x46   : > { %p1636_p11 = scmp.lt.s32.totalorder %s1257_s28, 3  ;;  %p1637_p12 = scmp.ge.s32.totalorder %s1257_s28, 1 }
  0x48   : > { %p236_p1 = pnand %p1637_p12, %p1636_p11 }
  0x49   : > { %s1407_s16 = sand.u32 (!%p236_p1), 1, %s1241_s24  }
  0x4a   : > { %239 = sbr.rel (%p236_p1) target bundleno = 432 (0x1b0), region = 28  ;;  %s971_s17 = sshll.u32 (!%p236_p1), %s1407_s16, 2 }
  0x4b   : > { %s242_s19 = scalar_lea.sflag (!%p236_p1), [#allocation6], %s1407_s16  ;;  %s1411_s23 = scalar_lea.vmem (!%p236_p1), [#allocation5], %s971_s17 }
  0x51   : > { %1228 = dma.done.wait (%p1343_p4), %s242_s19, 64  }
  0x52   : > { %1230 = vsyncadd (%p1343_p4), %s242_s19, 4294967232  ;;  %s1418_s18 = sshll.u32 %s1249_s26, 7  ;;  %p303_p5 = scmp.lt.s32.totalorder %s1249_s26, 1  ;;  %v1262_v0 = vmov 0.0  }
  0x53   : > { %s296_s20 = sld [smem:[#allocation3 + %s1418_s18]]  ;;  %s972_s29 = sshll.u32 %s1407_s16, 3 }
  0x54   : > { %s299_s21 = sld [smem:[#allocation4 + %s1418_s18]]  ;;  %s1426_s30 = scalar_lea.vmem [#allocation8], %s972_s29 }
  0x55   : > { %s338_s22 = sld [smem:[#allocation3 + %s1418_s18]]  ;;  %330 = vst [vmem:[%s1426_s30] sm:$0xff] %v1262_v0  ;;  %s1649_s26 = smov (!%p303_p5, %s1249_s26), 1 }
  0x56   : > { %s340_s0 = sld [smem:[#allocation4 + %s1418_s18]]  ;;  %s976_s6 = sshll.u32 %s1649_s26, 1 }
  0x59   : > { %p974_p4 = scmp.lt.s32.totalorder %s296_s20, 0 }
  0x5b   : > { %s1651_s20 = smov (%p974_p4, %s296_s20), 0  ;;  %p979_p7 = scmp.le.s32.totalorder %s338_s22, 0 }
  0x5c   : > { %p980_p10 = scmp.ge.s32.totalorder %s340_s0, 0  ;;  %p300_p3 = scmp.lt.s32.totalorder %s1651_s20, %s299_s21 }
  0x5e   : > { %p342_p9 = pnand %p980_p10, %p979_p7  ;;  %s1653_s20 = smov (!%p300_p3, %s1651_s20), %s299_s21 }
  0x5f   : > { %s975_s9 = sshll.u32 %s1653_s20, 1  ;;  %v348_v1 = vlaneseq (!%p342_p9)  ;;  %v346_v5 = vld [vmem:[%s1411_s23] sm:$0xf] (!%p342_p9)  ;;  %v1263_v19 = vmov (!%p342_p9), 1966171168  }
  0x60   : > { %p305_p13 = scmp.lt.s32.totalorder %s975_s9, 1  ;;  %345 = sbr.rel (%p342_p9) target bundleno = 407 (0x197), region = 40  ;;  %v434_v20 = vunpack.c.l.s4 (!%p342_p9), %v1263_v19 }
  0x61   : > { %v349_v4 = vshrl.u32 (!%p342_p9), %v348_v1, 7 }
  0x62   : > { %s1655_s9 = smov (!%p305_p13, %s975_s9), 1  ;;  %v435_v31 = vunpack.c.0.s8 (!%p342_p9), %v434_v20 }
  0x63   : > { %s308_s7 = sadd.s32 %s976_s6, %s1655_s9  ;;  %v350_v6 = vadd.s32 (!%p342_p9), 8, %v349_v4  ;;  %v1438_v7 = vsub.s32 (!%p342_p9), 0, %v349_v4  ;;  %v365_v8 = vsub.s32 (!%p342_p9), 2, %v349_v4  ;;  %v1440_v9 = vsub.s32 (!%p342_p9), 1, %v349_v4 }
  0x64   : > { %s977_s8 = sshll.u32 %s308_s7, 2  ;;  %v399_v10 = vsub.s32 (!%p342_p9), 3, %v349_v4  ;;  %v354_v11 = vcvt.s32.f32 (!%p342_p9), %v349_v4  ;;  %v1448_v42 = vsub.s32 (!%p342_p9), %v435_v31, %v349_v4 }
  0x65   : > { %s310_s15 = scalar_lea.vmem %s1627_s3, %s977_s8  ;;  %v362_v12 = vrot.slane (!%p342_p9), %v346_v5, %v1438_v7  ;;  %v366_v13 = vrot.slane (!%p342_p9), %v346_v5, %v365_v8  ;;  %v355_v14 = vcvt.s32.f32 (!%p342_p9), %v350_v6  ;;  %v396_v15 = vrot.slane (!%p342_p9), %v346_v5, %v1440_v9 }
  0x66   : > { %v1433_v2 = vld [vmem:[%s310_s15] sm:$0xff] (!%p342_p9)  ;;  %v400_v16 = vrot.slane (!%p342_p9), %v346_v5, %v399_v10 }
  0x67   : > { %v757_v3 = vcombine.high %v1433_v2, %v1433_v2  ;;  %v372_v17 = vrot.slane %v362_v12, %v1438_v7  ;;  %v376_v18 = vrot.slane %v366_v13, %v1438_v7  ;;  %v406_v21 = vrot.slane %v396_v15, %v1440_v9 }
  0x68   : > { %v410_v22 = vrot.slane %v400_v16, %v1440_v9 }
  0x69   : > { %823 = vmatprep.mubr.f32.mxu0 %v757_v3  ;;  %v377_v23 = vsub.f32 %v372_v17, %v354_v11  ;;  %v378_v24 = vsub.f32 %v376_v18, %v354_v11  ;;  %v411_v25 = vsub.f32 %v406_v21, %v354_v11  ;;  %v413_v27 = vsub.f32 %v406_v21, %v355_v14 }
  0x6a   : > { %v412_v26 = vsub.f32 %v410_v22, %v354_v11  ;;  %v414_v28 = vsub.f32 %v410_v22, %v355_v14  ;;  %v379_v32 = vsub.f32 %v372_v17, %v355_v14  ;;  %v380_v35 = vsub.f32 %v376_v18, %v355_v14 }
  0x6b   : > { %v381_v29 = vand.u32 2147483647, %v377_v23  ;;  %v382_v30 = vand.u32 2147483647, %v378_v24  ;;  %v415_v33 = vand.u32 2147483647, %v411_v25 }
  0x6c   : > { %v416_v34 = vand.u32 2147483647, %v412_v26  ;;  %v417_v38 = vand.u32 2147483647, %v413_v27  ;;  %v418_v39 = vand.u32 2147483647, %v414_v28 }
  0x6d   : > { %v385_v36 = vsub.f32 1.0, %v381_v29  ;;  %v386_v37 = vsub.f32 1.0, %v382_v30  ;;  %v383_v43 = vand.u32 2147483647, %v379_v32  ;;  %v419_v44 = vsub.f32 1.0, %v415_v33 }
  0x6e   : > { %v420_v45 = vsub.f32 1.0, %v416_v34  ;;  %v384_v46 = vand.u32 2147483647, %v380_v35  ;;  %v421_v47 = vsub.f32 1.0, %v417_v38  ;;  %v422_v48 = vsub.f32 1.0, %v418_v39 }
  0x6f   : > { %v389_v40 = vmax.f32 %v385_v36, 0.0  ;;  %v390_v41 = vmax.f32 %v386_v37, 0.0  ;;  %v387_v52 = vsub.f32 1.0, %v383_v43  ;;  %v1451_v53 = vmax.f32 %v419_v44, 0.0 }
  0x70   : > { %v1453_v54 = vmax.f32 %v420_v45, 0.0  ;;  %v388_v56 = vsub.f32 1.0, %v384_v46  ;;  %v1456_v57 = vmax.f32 %v421_v47, 0.0  ;;  %v1458_v58 = vmax.f32 %v422_v48, 0.0 }
  0x71   : > { %v431_v49 = vcombine.low %v389_v40, %v390_v41  ;;  %v432_v50 = vcombine.high %v389_v40, %v390_v41  ;;  %v1465_v3 = vmax.f32 %v387_v52, 0.0 }
  0x72   : > { %v1467_v4 = vmax.f32 %v388_v56, 0.0 }
  0x73   : > { %v439_v51 = vrot.slane %v431_v49, %v1448_v42  ;;  %v446_v55 = vrot.slane %v432_v50, %v1448_v42 }
  0x74   : > { %v481_v37 = vcombine.low %v1465_v3, %v1467_v4 }
  0x75   : > { %v447_v59 = vcombine.high %v439_v51, %v439_v51  ;;  %v455_v60 = vrot.slane %v439_v51, %v1448_v42  ;;  %v462_v1 = vrot.slane %v446_v55, %v1448_v42  ;;  %v448_v18 = vcombine.high %v446_v55, %v446_v55 }
  0x76   : > { %v489_v52 = vrot.slane %v481_v37, %v1448_v42 }
  0x77   : > { %v538_v61 = vrot.slane %v455_v60, %v1440_v9  ;;  %v534_v62 = vrot.slane %v455_v60, %v1438_v7  ;;  %v469_v63 = vrot.slane %v447_v59, %v1448_v42  ;;  %v477_v0 = vcombine.high %v455_v60, %v455_v60 }
  0x78   : > { %v570_v32 = vrot.slane %v462_v1, %v1440_v9  ;;  %v476_v33 = vrot.slane %v448_v18, %v1448_v42  ;;  %v566_v36 = vrot.slane %v462_v1, %v1438_v7  ;;  %v478_v41 = vcombine.high %v462_v1, %v462_v1 }
  0x79   : > { %v692_v5 = vmul.f32 %v538_v61, %v1453_v54  ;;  %v694_v6 = vmul.f32 %v538_v61, %v1458_v58  ;;  %v691_v8 = vmul.f32 %v534_v62, %v1451_v53  ;;  %v693_v10 = vmul.f32 %v534_v62, %v1456_v57 }
  0x7a   : > { %v546_v11 = vrot.slane %v469_v63, %v1440_v9  ;;  %v542_v12 = vrot.slane %v469_v63, %v1438_v7  ;;  %v554_v13 = vrot.slane %v477_v0, %v1440_v9  ;;  %v550_v14 = vrot.slane %v477_v0, %v1438_v7 }
  0x7b   : > { %v988_v15 = vpack.c.bf16 %v694_v6, %v692_v5  ;;  %v990_v16 = vpack.c.bf16 %v693_v10, %v691_v8  ;;  %v479_v17 = vcombine.high %v469_v63, %v469_v63  ;;  %v708_v44 = vmul.f32 %v570_v32, %v1453_v54 }
  0x7c   : > { %v696_v19 = vmul.f32 %v546_v11, %v1453_v54  ;;  %v698_v20 = vmul.f32 %v546_v11, %v1458_v58  ;;  %v695_v21 = vmul.f32 %v542_v12, %v1451_v53  ;;  %v697_v22 = vmul.f32 %v542_v12, %v1456_v57 }
  0x7d   : > { %989 = vmatprep.subr.bf16.mxu0 %v988_v15  ;;  %v700_v23 = vmul.f32 %v554_v13, %v1453_v54  ;;  %v702_v24 = vmul.f32 %v554_v13, %v1458_v58  ;;  %v699_v25 = vmul.f32 %v550_v14, %v1451_v53  ;;  %v701_v26 = vmul.f32 %v550_v14, %v1456_v57 }
  0x7e   : > { %991 = vmatpush1.bf16.msra.mxu0 %v990_v16  ;;  %v992_v27 = vpack.c.bf16 %v698_v20, %v696_v19  ;;  %v994_v28 = vpack.c.bf16 %v697_v22, %v695_v21  ;;  %v562_v29 = vrot.slane %v479_v17, %v1440_v9  ;;  %v558_v30 = vrot.slane %v479_v17, %v1438_v7 }
  0x7f   : > { %v996_v31 = vpack.c.bf16 %v702_v24, %v700_v23  ;;  %v998_v38 = vpack.c.bf16 %v701_v26, %v699_v25  ;;  %v710_v45 = vmul.f32 %v570_v32, %v1458_v58  ;;  %v578_v46 = vrot.slane %v476_v33, %v1440_v9 }
  0x80   : > { %993 = vmatprep.subr.bf16.mxu0 %v992_v27  ;;  %v704_v34 = vmul.f32 %v562_v29, %v1453_v54  ;;  %v706_v35 = vmul.f32 %v562_v29, %v1458_v58  ;;  %v703_v39 = vmul.f32 %v558_v30, %v1451_v53  ;;  %v705_v40 = vmul.f32 %v558_v30, %v1456_v57 }
  0x81   : > { %v707_v47 = vmul.f32 %v566_v36, %v1451_v53  ;;  %v709_v48 = vmul.f32 %v566_v36, %v1456_v57  ;;  %v574_v50 = vrot.slane %v476_v33, %v1438_v7  ;;  %v586_v51 = vrot.slane %v478_v41, %v1440_v9 }
  0x82   : > { %995 = vmatpush1.bf16.msra.mxu0 %v994_v28  ;;  %v1000_v43 = vpack.c.bf16 %v706_v35, %v704_v34  ;;  %v1002_v49 = vpack.c.bf16 %v705_v40, %v703_v39  ;;  %v1004_v55 = vpack.c.bf16 %v710_v45, %v708_v44  ;;  %v712_v56 = vmul.f32 %v578_v46, %v1453_v54 }
  0x83   : > { %997 = vmatprep.subr.bf16.mxu0 %v996_v31  ;;  %v714_v59 = vmul.f32 %v578_v46, %v1458_v58  ;;  %v480_v60 = vcombine.high %v476_v33, %v476_v33  ;;  %v1006_v61 = vpack.c.bf16 %v709_v48, %v707_v47  ;;  %v582_v62 = vrot.slane %v478_v41, %v1438_v7 }
  0x84   : > { %v711_v63 = vmul.f32 %v574_v50, %v1451_v53  ;;  %v713_v0 = vmul.f32 %v574_v50, %v1456_v57  ;;  %v716_v1 = vmul.f32 %v586_v51, %v1453_v54  ;;  %v718_v5 = vmul.f32 %v586_v51, %v1458_v58 }
  0x85   : > { %v1008_v6 = vpack.c.bf16 %v714_v59, %v712_v56  ;;  %v594_v8 = vrot.slane %v480_v60, %v1440_v9  ;;  %v505_v10 = vrot.slane %v489_v52, %v1448_v42  ;;  %v497_v11 = vcombine.high %v489_v52, %v489_v52 }
  0x86   : > { %999 = vmatpush1.bf16.msra.mxu0 %v998_v38  ;;  %v715_v12 = vmul.f32 %v582_v62, %v1451_v53  ;;  %v1010_v13 = vpack.c.bf16 %v713_v0, %v711_v63  ;;  %v1012_v14 = vpack.c.bf16 %v718_v5, %v716_v1  ;;  %v717_v15 = vmul.f32 %v582_v62, %v1456_v57 }
  0x87   : > { %1001 = vmatprep.subr.bf16.mxu0 %v1000_v43  ;;  %v590_v16 = vrot.slane %v480_v60, %v1438_v7  ;;  %v720_v17 = vmul.f32 %v594_v8, %v1453_v54  ;;  %v722_v18 = vmul.f32 %v594_v8, %v1458_v58  ;;  %v602_v19 = vrot.slane %v505_v10, %v1440_v9 }
  0x88   : > { %v519_v20 = vrot.slane %v497_v11, %v1448_v42  ;;  %v598_v21 = vrot.slane %v505_v10, %v1438_v7  ;;  %v482_v22 = vcombine.high %v1465_v3, %v1467_v4  ;;  %v1014_v23 = vpack.c.bf16 %v717_v15, %v715_v12 }
  0x89   : > { %v719_v24 = vmul.f32 %v590_v16, %v1451_v53  ;;  %v721_v25 = vmul.f32 %v590_v16, %v1456_v57  ;;  %v527_v26 = vcombine.high %v505_v10, %v505_v10  ;;  %v1016_v27 = vpack.c.bf16 %v722_v18, %v720_v17 }
  0x8a   : > { %1003 = vmatpush1.bf16.msra.mxu0 %v1002_v49  ;;  %v724_v28 = vmul.f32 %v602_v19, %v1453_v54  ;;  %v726_v29 = vmul.f32 %v602_v19, %v1458_v58  ;;  %v610_v30 = vrot.slane %v519_v20, %v1440_v9  ;;  %v723_v31 = vmul.f32 %v598_v21, %v1451_v53 }
  0x8b   : > { %1005 = vmatprep.subr.bf16.mxu0 %v1004_v55  ;;  %v725_v32 = vmul.f32 %v598_v21, %v1456_v57  ;;  %v496_v3 = vrot.slane %v482_v22, %v1448_v42  ;;  %v1018_v4 = vpack.c.bf16 %v721_v25, %v719_v24  ;;  %v606_v33 = vrot.slane %v519_v20, %v1438_v7 }
  0x8c   : > { %v618_v34 = vrot.slane %v527_v26, %v1440_v9  ;;  %v1020_v35 = vpack.c.bf16 %v726_v29, %v724_v28  ;;  %v728_v36 = vmul.f32 %v610_v30, %v1453_v54  ;;  %v730_v37 = vmul.f32 %v610_v30, %v1458_v58 }
  0x8d   : > { %v529_v38 = vcombine.high %v519_v20, %v519_v20  ;;  %v1022_v39 = vpack.c.bf16 %v725_v32, %v723_v31  ;;  %v512_v40 = vrot.slane %v496_v3, %v1448_v42  ;;  %v727_v41 = vmul.f32 %v606_v33, %v1451_v53 }
  0x8e   : > { %1007 = vmatpush1.bf16.msra.mxu0 %v1006_v61  ;;  %v729_v43 = vmul.f32 %v606_v33, %v1456_v57  ;;  %v732_v44 = vmul.f32 %v618_v34, %v1453_v54  ;;  %v614_v45 = vrot.slane %v527_v26, %v1438_v7  ;;  %v1024_v46 = vpack.c.bf16 %v730_v37, %v728_v36 }
  0x8f   : > { %1009 = vmatprep.subr.bf16.mxu0 %v1008_v6  ;;  %v734_v47 = vmul.f32 %v618_v34, %v1458_v58  ;;  %v626_v48 = vrot.slane %v529_v38, %v1440_v9  ;;  %v498_v49 = vcombine.high %v496_v3, %v496_v3  ;;  %v634_v50 = vrot.slane %v512_v40, %v1440_v9 }
  0x90   : > { %v1026_v51 = vpack.c.bf16 %v729_v43, %v727_v41  ;;  %v731_v52 = vmul.f32 %v614_v45, %v1451_v53  ;;  %v733_v55 = vmul.f32 %v614_v45, %v1456_v57  ;;  %v622_v56 = vrot.slane %v529_v38, %v1438_v7 }
  0x91   : > { %v1028_v59 = vpack.c.bf16 %v734_v47, %v732_v44  ;;  %v736_v60 = vmul.f32 %v626_v48, %v1453_v54  ;;  %v738_v61 = vmul.f32 %v626_v48, %v1458_v58  ;;  %v526_v62 = vrot.slane %v498_v49, %v1448_v42 }
  0x92   : > { %1011 = vmatpush1.bf16.msra.mxu0 %v1010_v13  ;;  %v740_v63 = vmul.f32 %v634_v50, %v1453_v54  ;;  %v742_v0 = vmul.f32 %v634_v50, %v1458_v58  ;;  %v1030_v1 = vpack.c.bf16 %v733_v55, %v731_v52  ;;  %v735_v5 = vmul.f32 %v622_v56, %v1451_v53 }
  0x93   : > { %1013 = vmatprep.subr.bf16.mxu0 %v1012_v14  ;;  %v737_v6 = vmul.f32 %v622_v56, %v1456_v57  ;;  %v630_v8 = vrot.slane %v512_v40, %v1438_v7  ;;  %v1032_v10 = vpack.c.bf16 %v738_v61, %v736_v60  ;;  %v642_v11 = vrot.slane %v526_v62, %v1440_v9 }
  0x94   : > { %v528_v12 = vcombine.high %v512_v40, %v512_v40  ;;  %v1036_v13 = vpack.c.bf16 %v742_v0, %v740_v63  ;;  %v638_v16 = vrot.slane %v526_v62, %v1438_v7  ;;  %v530_v20 = vcombine.high %v526_v62, %v526_v62 }
  0x95   : > { %v1034_v42 = vpack.c.bf16 %v737_v6, %v735_v5  ;;  %v739_v14 = vmul.f32 %v630_v8, %v1451_v53  ;;  %v741_v15 = vmul.f32 %v630_v8, %v1456_v57  ;;  %v744_v17 = vmul.f32 %v642_v11, %v1453_v54 }
  0x96   : > { %1015 = vmatpush1.bf16.msra.mxu0 %v1014_v23  ;;  %v746_v18 = vmul.f32 %v642_v11, %v1458_v58  ;;  %v650_v19 = vrot.slane %v528_v12, %v1440_v9  ;;  %v743_v22 = vmul.f32 %v638_v16, %v1451_v53  ;;  %v745_v23 = vmul.f32 %v638_v16, %v1456_v57 }
  0x97   : > { %1017 = vmatprep.subr.bf16.mxu0 %v1016_v27  ;;  %v1038_v21 = vpack.c.bf16 %v741_v15, %v739_v14  ;;  %v646_v24 = vrot.slane %v528_v12, %v1438_v7  ;;  %v658_v28 = vrot.slane %v530_v20, %v1440_v9  ;;  %v654_v32 = vrot.slane %v530_v20, %v1438_v7 }
  0x98   : > { %v1040_v25 = vpack.c.bf16 %v746_v18, %v744_v17  ;;  %v748_v26 = vmul.f32 %v650_v19, %v1453_v54  ;;  %v750_v27 = vmul.f32 %v650_v19, %v1458_v58  ;;  %v1042_v29 = vpack.c.bf16 %v745_v23, %v743_v22 }
  0x99   : > { %v747_v30 = vmul.f32 %v646_v24, %v1451_v53  ;;  %v749_v31 = vmul.f32 %v646_v24, %v1456_v57  ;;  %v754_v33 = vmul.f32 %v658_v28, %v1458_v58  ;;  %v751_v9 = vmul.f32 %v654_v32, %v1451_v53 }
  0x9a   : > { %1019 = vmatpush1.bf16.msra.mxu0 %v1018_v4  ;;  %v1044_v3 = vpack.c.bf16 %v750_v27, %v748_v26  ;;  %v752_v4 = vmul.f32 %v658_v28, %v1453_v54  ;;  %v830_v54 = vld [vmem:[%s1426_s30] sm:$0xff] }
  0x9b   : > { %1021 = vmatprep.subr.bf16.mxu0 %v1020_v35  ;;  %v1046_v34 = vpack.c.bf16 %v749_v31, %v747_v30  ;;  %v753_v35 = vmul.f32 %v654_v32, %v1456_v57 }
  0x9c   : > { %v1048_v36 = vpack.c.bf16 %v754_v33, %v752_v4 }
  0x9d   : > { %v1050_v37 = vpack.c.bf16 %v753_v35, %v751_v9 }
  0x9e   : > { %1023 = vmatpush1.bf16.msra.mxu0 %v1022_v39 }
  0x9f   : > { %1025 = vmatprep.subr.bf16.mxu0 %v1024_v46 }
  0xa2   : > { %1027 = vmatpush1.bf16.msra.mxu0 %v1026_v51 }
  0xa3   : > { %1029 = vmatprep.subr.bf16.mxu0 %v1028_v59 }
  0xa6   : > { %1031 = vmatpush1.bf16.msra.mxu0 %v1030_v1 }
  0xa7   : > { %1033 = vmatprep.subr.bf16.mxu0 %v1032_v10 }
  0xaa   : > { %1035 = vmatpush1.bf16.msra.mxu0 %v1034_v42 }
  0xab   : > { %1037 = vmatprep.subr.bf16.mxu0 %v1036_v13 }
  0xae   : > { %1039 = vmatpush1.bf16.msra.mxu0 %v1038_v21 }
  0xaf   : > { %1041 = vmatprep.subr.bf16.mxu0 %v1040_v25 }
  0xb2   : > { %1043 = vmatpush1.bf16.msra.mxu0 %v1042_v29 }
  0xb3   : > { %1045 = vmatprep.subr.bf16.mxu0 %v1044_v3 }
  0xb6   : > { %1047 = vmatpush1.bf16.msra.mxu0 %v1046_v34 }
  0xb7   : > { %1049 = vmatprep.subr.bf16.mxu0 %v1048_v36 }
  0xba   : > { %1051 = vmatpush1.bf16.msra.mxu0 %v1050_v37 }
  0xbd   : > { %824 = vmatmul.mubr.f32.vlgmr.msra.gmra.mrb[0].mxu0 %v1433_v2 }
 0x190   : > { %v825_v7 = vpop.f32.mrb[0].mxu0 }
 0x191   : > { %v827_v38 = vpop.f32.mrb[1].mxu0 }
 0x192   : > { %v833_v39 = vcombine.low %v825_v7, %v827_v38 }
 0x194   : > { %v835_v58 = vadd.f32 %v833_v39, %v830_v54 }
 0x196   : > { %836 = vst [vmem:[%s1426_s30] sm:$0xff] %v835_v58 }
 0x197 PF: > { %s1581_s19 = scalar_lea.hbm %s1628_s4, %s1418_s18  ;;  %s854_s23 = sshll.u32 %s1426_s30, 4  ;;  %s855_s23 = int_to_ptr.vmem [resolvable:$true] %s854_s23 }
 0x198   : > { %s838_s20 = scalar_lea.sflag [#allocation7], %s1407_s16  ;;  %s1173_s21 = scalar_lea.vmem %s855_s23, 128 }
 0x199   : > { %p1174_p2 = scmp.ne.s32.totalorder %s855_s23, %s1173_s21  ;;  %p1638_p0 = scmp.ne.s32.totalorder %s1633_s10, 0 }
 0x19a   : > { %s1264_s22 = smov [#allocation8]  }
 0x19b   : > { %p1175_p6 = pnand %p1174_p2, %p1638_p0  ;;  %s1177_s0 = sshll.u32 %s1264_s22, 4  ;;  %s1178_s0 = int_to_ptr.vmem [resolvable:$false] %s1177_s0 }
 0x19c   : > { %s1179_s29 = scalar_lea.vmem %s1178_s0, 256  ;;  %p1180_p11 = scmp.lt.s32.totalorder %s855_s23, %s1178_s0 }
 0x19d   : > { %p1176_p8 = pneg %p1175_p6  ;;  %p1181_p12 = scmp.lt.s32.totalorder %s1179_s29, %s1173_s21 }
 0x19f   : > { %p1182_p1 = por %p1181_p12, %p1180_p11 }
 0x1a1   : > { %p1183_p5 = pnand %p1182_p1, %p1176_p8 }
 0x1a3   : > { %1186 = shalt.err (!%p1183_p5)
}
 0x1a4   : > { %s1187_s16 = scalar_lea.hbm %s1581_s19, 128  ;;  %s1191_s9 = scalar_lea.hbm %s1628_s4, 256 }
 0x1a5   : > { %p1188_p4 = scmp.ne.s32.totalorder %s1581_s19, %s1187_s16  ;;  %p1192_p3 = scmp.lt.u32.totalorder %s1581_s19, %s1628_s4 }
 0x1a6   : > { %p1193_p9 = scmp.lt.u32.totalorder %s1191_s9, %s1187_s16  ;;  %p1195_p2 = scmp.lt.u32.totalorder %s1187_s16, %s1581_s19 }
 0x1a7   : > { %p1189_p7 = pnand %p1188_p4, %p1638_p0 }
 0x1a8   : > { %p1194_p13 = por %p1193_p9, %p1192_p3 }
 0x1a9   : > { %p1190_p10 = pneg %p1189_p7 }
 0x1aa   : > { %p1196_p6 = por %p1195_p2, %p1194_p13 }
 0x1ac   : > { %p1197_p8 = pnand %p1196_p6, %p1190_p10 }
 0x1ae   : > { %1200 = shalt.err (!%p1197_p8)
}
 0x1af   : > { %1054 = dma.vmem_to_hbm [thread:$0]  (%p1638_p0), %s855_s23, 128, %s1581_s19, %s838_s20  }
 0x1b0 PF: > { %s866_s8 = sand.u32 1, %s1237_s1   ;;  %p1639_p11 = scmp.ne.s32.totalorder %s1634_s12, 0 }
 0x1b1   : > { %p1640_p12 = scmp.ge.s32.totalorder %s1257_s28, 2  ;;  %s867_s13 = scalar_lea.sflag [#allocation7], %s866_s8 }
 0x1b3   : > { %p1061_p1 = pnand %p1640_p12, %p1639_p11 }
 0x1b5   : > { %1232 = dma.done.wait (!%p1061_p1), %s867_s13, 128  }
 0x1b6   : > { %1234 = vsyncadd (!%p1061_p1), %s867_s13, 4294967168  ;;  %s30_s28 = sadd.s32 1, %s1257_s28   ;;  %s1641_s1 = smov %s1241_s24 }
 0x1b7   : > { %p27_p5 = scmp.ge.s32.totalorder %s30_s28, 4   ;;  %s1642_s24 = smov %s1245_s25 }
 0x1b8   : > { %s1643_s25 = smov %s1352_s11  ;;  %s1644_s26 = smov %s1253_s27 }
 0x1b9   : > { %s1645_s27 = smov %s1647_s5  ;;  %29 = sbr.rel (!%p27_p5) target bundleno = 31 (0x1f), region = 84 }
 0x1c0   :  { %872 = vsyncpa [#allocation6], 1 }
 0x1c1   :  { %874 = vsyncpa [#allocation6 + $0x1], 1 }
 0x1c2   :  { %875 = vsyncpa [#allocation7], 1 }
 0x1c3   :  { %877 = vsyncpa [#allocation7 + $0x1], 1 }

</bundles_post_ra>
